<compile_context>
chip_gen: v6e
topology: v6e:2x2x1
jax: 0.10.0
libtpu: 0.0.40
codegen_flags: <defaults>
</compile_context>

<pallas_src>
import jax
import jax.numpy as jnp
from jax.experimental import pallas as pl
from jax.experimental.pallas import tpu as pltpu

EPS = 1e-5          # PyTorch BatchNorm1d default eps
LANE = 128          # TPU lane width
NEG_FILL = -1e30    # bias fill for padded output columns (softmax weight -> 0)


def _round_up(x, m):
    return (x + m - 1) // m * m


# ----------------------------------------------------------------------------
# Kernel: 3 bf16 matmuls (f32 accumulation) + 2 ReLUs + exact softmax on one
# (tile_b, *) batch tile. All BN math is pre-folded into the weights/biases.
# ----------------------------------------------------------------------------
def classifier_encoder_kernel(x_ref, w1_ref, b1_ref, w2_ref, b2_ref,
                              w3_ref, b3_ref, o_ref):
    # x streams from HBM in its original dtype; cast to bf16 for the MXU.
    x = x_ref[...].astype(jnp.bfloat16)

    # Linear1 (BN0 folded into rows, BN1 folded into columns) -> ReLU
    h = jnp.dot(x, w1_ref[...], preferred_element_type=jnp.float32) + b1_ref[...]
    h = jnp.maximum(h, 0.0)

    # Dropout (eval mode) is identity.

    # Linear2 (BN2 folded into columns) -> ReLU
    h = jnp.dot(h.astype(jnp.bfloat16), w2_ref[...],
                preferred_element_type=jnp.float32) + b2_ref[...]
    h = jnp.maximum(h, 0.0)

    # Output linear (padded columns carry a -1e30 bias -> softmax weight 0)
    logits = jnp.dot(h.astype(jnp.bfloat16), w3_ref[...],
                     preferred_element_type=jnp.float32) + b3_ref[...]

    # Softmax along the lane axis; exact division so rows sum to 1 to f32
    # rounding (the approx reciprocal was not accurate enough for that).
    m = jnp.max(logits, axis=-1, keepdims=True)
    e = jnp.exp(logits - m)
    denom = jnp.sum(e, axis=-1, keepdims=True)
    o_ref[...] = (e / denom).astype(o_ref.dtype)


# ----------------------------------------------------------------------------
# One-time parameter preparation: fold eval-mode BatchNorms, pad hidden/output
# feature dims to 128 lanes, cast weights to bf16 (biases stay f32).
# The K dim of w1 is left UNPADDED so x needs no feature-dim padding.
# ----------------------------------------------------------------------------
def _bn_scale_shift(g, b, m, v, eps=EPS):
    s = g * jax.lax.rsqrt(v + eps)      # y = x * s + t
    t = b - m * s
    return s, t


def fold_and_pad_params(p, lane=LANE):
    s0, t0 = _bn_scale_shift(p["g0"], p["b0"], p["m0"], p["v0"])
    s1, t1 = _bn_scale_shift(p["g1"], p["b1"], p["m1"], p["v1"])
    s2, t2 = _bn_scale_shift(p["g2"], p["b2"], p["m2"], p["v2"])

    # BN0 folds into Linear1 as a row scale; BN1 folds in as a column scale.
    w1 = p["w1"] * s0[:, None] * s1[None, :]
    b1 = (t0 @ p["w1"] + p["bi1"]) * s1 + t1
    # BN2 folds into Linear2 as a column scale.
    w2 = p["w2"] * s2[None, :]
    b2 = p["bi2"] * s2 + t2
    w3 = p["w3"]
    b3 = p["bi3"]

    d_in, d1 = w1.shape
    d2 = w2.shape[1]
    d_out = w3.shape[1]
    d1_p, d2_p, d_out_p = (_round_up(d, lane) for d in (d1, d2, d_out))

    def pad_w(w, rows, cols):
        return jnp.pad(w, ((0, rows - w.shape[0]), (0, cols - w.shape[1])))

    def pad_b(b, cols, fill=0.0):
        return jnp.pad(b[None, :], ((0, 0), (0, cols - b.shape[0])),
                       constant_values=fill)

    return dict(
        w1=pad_w(w1, d_in, d1_p).astype(jnp.bfloat16),     # (d_in,  d1_p)
        b1=pad_b(b1, d1_p).astype(jnp.float32),
        w2=pad_w(w2, d1_p, d2_p).astype(jnp.bfloat16),      # (d1_p, d2_p)
        b2=pad_b(b2, d2_p).astype(jnp.float32),
        w3=pad_w(w3, d2_p, d_out_p).astype(jnp.bfloat16),    # (d2_p, d_out_p)
        b3=pad_b(b3, d_out_p, fill=NEG_FILL).astype(jnp.float32),
        d_in=d_in, d_out=d_out,
    )


# ----------------------------------------------------------------------------
# Wrapper: batch-tiled pallas_call with resident (constant-index) weights.
# ----------------------------------------------------------------------------
def _device_caps():
    """(batch-tile cap, minimum grid steps) per TPU generation."""
    try:
        kind = jax.devices()[0].device_kind.lower()
    except Exception:
        kind = ""
    if "v7" in kind:
        return 512, 2        # 64 MiB VMEM, 2 TensorCores -> want >= 2 steps
    if "v6" in kind:
        return 1024, 1       # plenty of VMEM headroom
    return 512, 1            # v5e / unknown: stay modest


def classifier_encoder_forward(x, folded):
    B, d_in = x.shape
    assert d_in == folded["d_in"]

    w1, b1 = folded["w1"], folded["b1"]
    w2, b2 = folded["w2"], folded["b2"]
    w3, b3 = folded["w3"], folded["b3"]
    d1_p = w1.shape[1]
    d2_p = w2.shape[1]
    d_out_p = w3.shape[1]

    # Even-split batch tile (multiple of 8 sublanes) to minimize pad waste.
    cap, min_steps = _device_caps()
    n_splits = max(pl.cdiv(B, cap), min_steps)
    tile_b = min(_round_up(pl.cdiv(B, n_splits), 8), _round_up(B, 8))
    b_pad = pl.cdiv(B, tile_b) * tile_b

    # Only pad batch rows, and only if needed; feature dim is never padded.
    x_in = x if b_pad == B else jnp.pad(x, ((0, b_pad - B), (0, 0)))
    grid = (b_pad // tile_b,)

    # Explicit VMEM budget: resident weights (x2 in case they end up
    # double-buffered) + double-buffered x/out tiles + activation temps.
    itemsize_x = jnp.dtype(x.dtype).itemsize
    weight_bytes = sum(int(a.size) * jnp.dtype(a.dtype).itemsize
                       for a in (w1, b1, w2, b2, w3, b3))
    x_tile_bytes = tile_b * d_in * itemsize_x
    out_tile_bytes = tile_b * d_out_p * 4
    act_bytes = 3 * tile_b * max(d1_p, d2_p, d_out_p) * 4
    needed = 2 * weight_bytes + 2 * x_tile_bytes + 2 * out_tile_bytes + act_bytes
    vmem_limit = int(min(max(2 * needed + (4 << 20), 32 << 20), 48 << 20))

    cost = pl.CostEstimate(
        flops=2 * b_pad * (d_in * d1_p + d1_p * d2_p + d2_p * d_out_p),
        transcendentals=b_pad * d_out_p,
        bytes_accessed=int(b_pad * d_in * itemsize_x + weight_bytes
                           + b_pad * d_out_p * 4),
    )

    def run(single_buffer_weights):
        pm = pl.Buffered(1) if single_buffer_weights else None

        def wspec(shape):
            if pm is None:
                return pl.BlockSpec(shape, lambda i: (0, 0))
            return pl.BlockSpec(shape, lambda i: (0, 0), pipeline_mode=pm)

        return pl.pallas_call(
            classifier_encoder_kernel,
            out_shape=jax.ShapeDtypeStruct((b_pad, d_out_p), jnp.float32),
            grid=grid,
            in_specs=[
                pl.BlockSpec((tile_b, d_in), lambda i: (i, 0)),   # x tile
                wspec(w1.shape), wspec(b1.shape),                 # resident
                wspec(w2.shape), wspec(b2.shape),
                wspec(w3.shape), wspec(b3.shape),
            ],
            out_specs=pl.BlockSpec((tile_b, d_out_p), lambda i: (i, 0)),
            compiler_params=pltpu.CompilerParams(
                dimension_semantics=("parallel",),
                vmem_limit_bytes=vmem_limit),
            cost_estimate=cost,
        )(x_in, w1, b1, w2, b2, w3, b3)

    try:
        out = run(True)          # single-buffered resident weights
    except Exception:
        out = run(False)         # fallback: default (double) buffering

    return out[:B, :folded["d_out"]]


# ----------------------------------------------------------------------------
# Parameter init + pure-JAX reference (unfolded, all-f32) for correctness.
# ----------------------------------------------------------------------------
def init_params(key, input_dim, first_dim, second_dim, output_dim):
    ks = jax.random.split(key, 18)

    def lin(kw, kb, fan_in, fan_out):
        bound = 1.0 / jnp.sqrt(jnp.float32(fan_in))
        w = jax.random.uniform(kw, (fan_in, fan_out), jnp.float32, -bound, bound)
        b = jax.random.uniform(kb, (fan_out,), jnp.float32, -bound, bound)
        return w, b

    w1, bi1 = lin(ks[0], ks[1], input_dim, first_dim)
    w2, bi2 = lin(ks[2], ks[3], first_dim, second_dim)
    w3, bi3 = lin(ks[4], ks[5], second_dim, output_dim)

    def bn(dim, kg, kb, km, kv):
        g = 1.0 + 0.1 * jax.random.normal(kg, (dim,), jnp.float32)
        b = 0.1 * jax.random.normal(kb, (dim,), jnp.float32)
        m = 0.05 * jax.random.normal(km, (dim,), jnp.float32)
        v = 1.0 + 0.2 * jax.random.uniform(kv, (dim,), jnp.float32)
        return g, b, m, v

    g0, b0, m0, v0 = bn(input_dim, ks[6], ks[7], ks[8], ks[9])
    g1, b1, m1, v1 = bn(first_dim, ks[10], ks[11], ks[12], ks[13])
    g2, b2, m2, v2 = bn(second_dim, ks[14], ks[15], ks[16], ks[17])

    return dict(
        g0=g0, b0=b0, m0=m0, v0=v0,
        w1=w1, bi1=bi1,
        g1=g1, b1=b1, m1=m1, v1=v1,
        w2=w2, bi2=bi2,
        g2=g2, b2=b2, m2=m2, v2=v2,
        w3=w3, bi3=bi3,
    )


def _bn_apply(x, g, b, m, v):
    return (x - m) * jax.lax.rsqrt(v + EPS) * g + b


def reference_forward(x, p):
    h = _bn_apply(x, p["g0"], p["b0"], p["m0"], p["v0"])
    h = h @ p["w1"] + p["bi1"]
    h = _bn_apply(h, p["g1"], p["b1"], p["m1"], p["v1"])
    h = jnp.maximum(h, 0.0)
    h = h @ p["w2"] + p["bi2"]
    h = _bn_apply(h, p["g2"], p["b2"], p["m2"], p["v2"])
    h = jnp.maximum(h, 0.0)
    logits = h @ p["w3"] + p["bi3"]
    return jax.nn.softmax(logits, axis=-1)


if __name__ == "__main__":
    input_dim, first_dim, second_dim, output_dim = 32, 64, 48, 16
    B = 8

    key = jax.random.PRNGKey(0)
    kx, kp = jax.random.split(key)
    x = jax.random.normal(kx, (B, input_dim), jnp.float32)
    params = init_params(kp, input_dim, first_dim, second_dim, output_dim)

    folded = fold_and_pad_params(params)          # one-time fold + pad + bf16
    out = jax.block_until_ready(classifier_encoder_forward(x, folded))

    ref = reference_forward(x, params)            # all-f32 reference
    assert out.shape == (B, output_dim), out.shape
    # bf16 matmul inputs with f32 accumulation: allow a small extra tolerance
    # over the pure-f32 reference.
    assert jnp.allclose(out, ref, atol=2e-3, rtol=2e-2), \
        float(jnp.max(jnp.abs(out - ref)))
    # Exact softmax normalization -> rows sum to 1 to f32 rounding.
    assert jnp.allclose(jnp.sum(out, axis=-1), 1.0, atol=1e-3), \
        "softmax rows must sum to 1"

    print("KERNEL_OK")
</pallas_src>

<mosaic_0001>
module attributes {stable_mosaic.version = 11 : i64} {
  func.func @classifier_encoder_kernel(%arg0: i32, %arg1: memref<8x32xf32, #tpu.memory_space<vmem>>, %arg2: memref<32x128xbf16, #tpu.memory_space<vmem>>, %arg3: memref<1x128xf32, #tpu.memory_space<vmem>>, %arg4: memref<128x128xbf16, #tpu.memory_space<vmem>>, %arg5: memref<1x128xf32, #tpu.memory_space<vmem>>, %arg6: memref<128x128xbf16, #tpu.memory_space<vmem>>, %arg7: memref<1x128xf32, #tpu.memory_space<vmem>>, %arg8: memref<8x128xf32, #tpu.memory_space<vmem>>) attributes {dimension_semantics = [#tpu.dimension_semantics<parallel>], iteration_bounds = array<i64: 1>, scalar_prefetch = 0 : i64, scratch_operands = 0 : i64, tpu.core_type = #tpu.core_type<tc>, window_params = [{transform_indices = @transform_0, window_bounds = array<i64: 8, 32>}, {pipeline_mode = #tpu.pipeline_mode<synchronous>, transform_indices = @transform_1, window_bounds = array<i64: 32, 128>}, {pipeline_mode = #tpu.pipeline_mode<synchronous>, transform_indices = @transform_2, window_bounds = array<i64: 1, 128>}, {pipeline_mode = #tpu.pipeline_mode<synchronous>, transform_indices = @transform_3, window_bounds = array<i64: 128, 128>}, {pipeline_mode = #tpu.pipeline_mode<synchronous>, transform_indices = @transform_4, window_bounds = array<i64: 1, 128>}, {pipeline_mode = #tpu.pipeline_mode<synchronous>, transform_indices = @transform_5, window_bounds = array<i64: 128, 128>}, {pipeline_mode = #tpu.pipeline_mode<synchronous>, transform_indices = @transform_6, window_bounds = array<i64: 1, 128>}, {transform_indices = @transform_7, window_bounds = array<i64: 8, 128>}]} {
    %c0 = arith.constant 0 : index
    %c0_0 = arith.constant 0 : index
    %0 = vector.load %arg1[%c0, %c0_0] : memref<8x32xf32, #tpu.memory_space<vmem>>, vector<8x32xf32>
    %1 = arith.truncf %0 : vector<8x32xf32> to vector<8x32xbf16>
    %c0_1 = arith.constant 0 : index
    %c0_2 = arith.constant 0 : index
    %2 = vector.load %arg2[%c0_1, %c0_2] : memref<32x128xbf16, #tpu.memory_space<vmem>>, vector<32x128xbf16>
    %cst = arith.constant dense<0.000000e+00> : vector<8x128xf32>
    %3 = tpu.matmul %1, %2, %cst {dimension_numbers = #tpu.dot_dimension_numbers<[1], [0], [0], [1], [0, 0, 1, 1], [], []>} : vector<8x32xbf16>, vector<32x128xbf16>, vector<8x128xf32> -> vector<8x128xf32>
    %c0_3 = arith.constant 0 : index
    %c0_4 = arith.constant 0 : index
    %4 = vector.load %arg3[%c0_3, %c0_4] : memref<1x128xf32, #tpu.memory_space<vmem>>, vector<1x128xf32>
    %5 = vector.broadcast %4 : vector<1x128xf32> to vector<8x128xf32>
    %6 = arith.addf %3, %5 : vector<8x128xf32>
    %cst_5 = arith.constant 0.000000e+00 : f32
    %7 = vector.broadcast %cst_5 : f32 to vector<8x128xf32>
    %8 = arith.maximumf %6, %7 : vector<8x128xf32>
    %9 = arith.truncf %8 : vector<8x128xf32> to vector<8x128xbf16>
    %c0_6 = arith.constant 0 : index
    %c0_7 = arith.constant 0 : index
    %10 = vector.load %arg4[%c0_6, %c0_7] : memref<128x128xbf16, #tpu.memory_space<vmem>>, vector<128x128xbf16>
    %cst_8 = arith.constant dense<0.000000e+00> : vector<8x128xf32>
    %11 = tpu.matmul %9, %10, %cst_8 {dimension_numbers = #tpu.dot_dimension_numbers<[1], [0], [0], [1], [0, 0, 1, 1], [], []>} : vector<8x128xbf16>, vector<128x128xbf16>, vector<8x128xf32> -> vector<8x128xf32>
    %c0_9 = arith.constant 0 : index
    %c0_10 = arith.constant 0 : index
    %12 = vector.load %arg5[%c0_9, %c0_10] : memref<1x128xf32, #tpu.memory_space<vmem>>, vector<1x128xf32>
    %13 = vector.broadcast %12 : vector<1x128xf32> to vector<8x128xf32>
    %14 = arith.addf %11, %13 : vector<8x128xf32>
    %cst_11 = arith.constant 0.000000e+00 : f32
    %15 = vector.broadcast %cst_11 : f32 to vector<8x128xf32>
    %16 = arith.maximumf %14, %15 : vector<8x128xf32>
    %17 = arith.truncf %16 : vector<8x128xf32> to vector<8x128xbf16>
    %c0_12 = arith.constant 0 : index
    %c0_13 = arith.constant 0 : index
    %18 = vector.load %arg6[%c0_12, %c0_13] : memref<128x128xbf16, #tpu.memory_space<vmem>>, vector<128x128xbf16>
    %cst_14 = arith.constant dense<0.000000e+00> : vector<8x128xf32>
    %19 = tpu.matmul %17, %18, %cst_14 {dimension_numbers = #tpu.dot_dimension_numbers<[1], [0], [0], [1], [0, 0, 1, 1], [], []>} : vector<8x128xbf16>, vector<128x128xbf16>, vector<8x128xf32> -> vector<8x128xf32>
    %c0_15 = arith.constant 0 : index
    %c0_16 = arith.constant 0 : index
    %20 = vector.load %arg7[%c0_15, %c0_16] : memref<1x128xf32, #tpu.memory_space<vmem>>, vector<1x128xf32>
    %21 = vector.broadcast %20 : vector<1x128xf32> to vector<8x128xf32>
    %22 = arith.addf %19, %21 : vector<8x128xf32>
    %cst_17 = arith.constant dense<0xFF800000> : vector<8xf32>
    %23 = vector.multi_reduction <maximumf>, %22, %cst_17 [1] : vector<8x128xf32> to vector<8xf32>
    %24 = vector.shape_cast %23 : vector<8xf32> to vector<8x1xf32>
    %25 = vector.broadcast %24 : vector<8x1xf32> to vector<8x128xf32>
    %26 = arith.subf %22, %25 : vector<8x128xf32>
    %27 = math.exp %26 : vector<8x128xf32>
    %cst_18 = arith.constant dense<0.000000e+00> : vector<8xf32>
    %28 = vector.multi_reduction <add>, %27, %cst_18 [1] : vector<8x128xf32> to vector<8xf32>
    %29 = vector.shape_cast %28 : vector<8xf32> to vector<8x1xf32>
    %30 = vector.broadcast %29 : vector<8x1xf32> to vector<8x128xf32>
    %31 = arith.divf %27, %30 : vector<8x128xf32>
    %c0_19 = arith.constant 0 : index
    %c0_20 = arith.constant 0 : index
    %32 = vector.load %arg8[%c0_19, %c0_20] : memref<8x128xf32, #tpu.memory_space<vmem>>, vector<8x128xf32>
    tpu.vector_store %arg8[%c0_19, %c0_20], %31 {strides = array<i32>} : memref<8x128xf32, #tpu.memory_space<vmem>>, vector<8x128xf32>,
    return
  }
  func.func @transform_0(%arg0: i32) -> (i32, i32) {
    %c0_i32 = arith.constant 0 : i32
    %c0_i32_0 = arith.constant 0 : i32
    return %arg0, %c0_i32 : i32, i32
  }
  func.func @transform_1(%arg0: i32) -> (i32, i32) {
    %c0_i32 = arith.constant 0 : i32
    %c0_i32_0 = arith.constant 0 : i32
    %c0_i32_1 = arith.constant 0 : i32
    return %c0_i32, %c0_i32_0 : i32, i32
  }
  func.func @transform_2(%arg0: i32) -> (i32, i32) {
    %c0_i32 = arith.constant 0 : i32
    %c0_i32_0 = arith.constant 0 : i32
    %c0_i32_1 = arith.constant 0 : i32
    return %c0_i32, %c0_i32_0 : i32, i32
  }
  func.func @transform_3(%arg0: i32) -> (i32, i32) {
    %c0_i32 = arith.constant 0 : i32
    %c0_i32_0 = arith.constant 0 : i32
    %c0_i32_1 = arith.constant 0 : i32
    return %c0_i32, %c0_i32_0 : i32, i32
  }
  func.func @transform_4(%arg0: i32) -> (i32, i32) {
    %c0_i32 = arith.constant 0 : i32
    %c0_i32_0 = arith.constant 0 : i32
    %c0_i32_1 = arith.constant 0 : i32
    return %c0_i32, %c0_i32_0 : i32, i32
  }
  func.func @transform_5(%arg0: i32) -> (i32, i32) {
    %c0_i32 = arith.constant 0 : i32
    %c0_i32_0 = arith.constant 0 : i32
    %c0_i32_1 = arith.constant 0 : i32
    return %c0_i32, %c0_i32_0 : i32, i32
  }
  func.func @transform_6(%arg0: i32) -> (i32, i32) {
    %c0_i32 = arith.constant 0 : i32
    %c0_i32_0 = arith.constant 0 : i32
    %c0_i32_1 = arith.constant 0 : i32
    return %c0_i32, %c0_i32_0 : i32, i32
  }
  func.func @transform_7(%arg0: i32) -> (i32, i32) {
    %c0_i32 = arith.constant 0 : i32
    %c0_i32_0 = arith.constant 0 : i32
    return %arg0, %c0_i32 : i32, i32
  }
}

module attributes {stable_mosaic.version = 11 : i64} {
  func.func @classifier_encoder_kernel(%arg0: i32, %arg1: memref<8x32xf32, #tpu.memory_space<vmem>>, %arg2: memref<32x128xbf16, #tpu.memory_space<vmem>>, %arg3: memref<1x128xf32, #tpu.memory_space<vmem>>, %arg4: memref<128x128xbf16, #tpu.memory_space<vmem>>, %arg5: memref<1x128xf32, #tpu.memory_space<vmem>>, %arg6: memref<128x128xbf16, #tpu.memory_space<vmem>>, %arg7: memref<1x128xf32, #tpu.memory_space<vmem>>, %arg8: memref<8x128xf32, #tpu.memory_space<vmem>>) attributes {dimension_semantics = [#tpu.dimension_semantics<parallel>], iteration_bounds = array<i64: 1>, scalar_prefetch = 0 : i64, scratch_operands = 0 : i64, tpu.core_type = #tpu.core_type<tc>, window_params = [{transform_indices = @transform_0, window_bounds = array<i64: 8, 32>}, {pipeline_mode = #tpu.pipeline_mode<synchronous>, transform_indices = @transform_1, window_bounds = array<i64: 32, 128>}, {pipeline_mode = #tpu.pipeline_mode<synchronous>, transform_indices = @transform_2, window_bounds = array<i64: 1, 128>}, {pipeline_mode = #tpu.pipeline_mode<synchronous>, transform_indices = @transform_3, window_bounds = array<i64: 128, 128>}, {pipeline_mode = #tpu.pipeline_mode<synchronous>, transform_indices = @transform_4, window_bounds = array<i64: 1, 128>}, {pipeline_mode = #tpu.pipeline_mode<synchronous>, transform_indices = @transform_5, window_bounds = array<i64: 128, 128>}, {pipeline_mode = #tpu.pipeline_mode<synchronous>, transform_indices = @transform_6, window_bounds = array<i64: 1, 128>}, {transform_indices = @transform_7, window_bounds = array<i64: 8, 128>}]} {
    %c0 = arith.constant 0 : index
    %c0_0 = arith.constant 0 : index
    %0 = vector.load %arg1[%c0, %c0_0] : memref<8x32xf32, #tpu.memory_space<vmem>>, vector<8x32xf32>
    %1 = arith.truncf %0 : vector<8x32xf32> to vector<8x32xbf16>
    %c0_1 = arith.constant 0 : index
    %c0_2 = arith.constant 0 : index
    %2 = vector.load %arg2[%c0_1, %c0_2] : memref<32x128xbf16, #tpu.memory_space<vmem>>, vector<32x128xbf16>
    %cst = arith.constant dense<0.000000e+00> : vector<8x128xf32>
    %3 = tpu.matmul %1, %2, %cst {dimension_numbers = #tpu.dot_dimension_numbers<[1], [0], [0], [1], [0, 0, 1, 1], [], []>} : vector<8x32xbf16>, vector<32x128xbf16>, vector<8x128xf32> -> vector<8x128xf32>
    %c0_3 = arith.constant 0 : index
    %c0_4 = arith.constant 0 : index
    %4 = vector.load %arg3[%c0_3, %c0_4] : memref<1x128xf32, #tpu.memory_space<vmem>>, vector<1x128xf32>
    %5 = vector.broadcast %4 : vector<1x128xf32> to vector<8x128xf32>
    %6 = arith.addf %3, %5 : vector<8x128xf32>
    %cst_5 = arith.constant 0.000000e+00 : f32
    %7 = vector.broadcast %cst_5 : f32 to vector<8x128xf32>
    %8 = arith.maximumf %6, %7 : vector<8x128xf32>
    %9 = arith.truncf %8 : vector<8x128xf32> to vector<8x128xbf16>
    %c0_6 = arith.constant 0 : index
    %c0_7 = arith.constant 0 : index
    %10 = vector.load %arg4[%c0_6, %c0_7] : memref<128x128xbf16, #tpu.memory_space<vmem>>, vector<128x128xbf16>
    %cst_8 = arith.constant dense<0.000000e+00> : vector<8x128xf32>
    %11 = tpu.matmul %9, %10, %cst_8 {dimension_numbers = #tpu.dot_dimension_numbers<[1], [0], [0], [1], [0, 0, 1, 1], [], []>} : vector<8x128xbf16>, vector<128x128xbf16>, vector<8x128xf32> -> vector<8x128xf32>
    %c0_9 = arith.constant 0 : index
    %c0_10 = arith.constant 0 : index
    %12 = vector.load %arg5[%c0_9, %c0_10] : memref<1x128xf32, #tpu.memory_space<vmem>>, vector<1x128xf32>
    %13 = vector.broadcast %12 : vector<1x128xf32> to vector<8x128xf32>
    %14 = arith.addf %11, %13 : vector<8x128xf32>
    %cst_11 = arith.constant 0.000000e+00 : f32
    %15 = vector.broadcast %cst_11 : f32 to vector<8x128xf32>
    %16 = arith.maximumf %14, %15 : vector<8x128xf32>
    %17 = arith.truncf %16 : vector<8x128xf32> to vector<8x128xbf16>
    %c0_12 = arith.constant 0 : index
    %c0_13 = arith.constant 0 : index
    %18 = vector.load %arg6[%c0_12, %c0_13] : memref<128x128xbf16, #tpu.memory_space<vmem>>, vector<128x128xbf16>
    %cst_14 = arith.constant dense<0.000000e+00> : vector<8x128xf32>
    %19 = tpu.matmul %17, %18, %cst_14 {dimension_numbers = #tpu.dot_dimension_numbers<[1], [0], [0], [1], [0, 0, 1, 1], [], []>} : vector<8x128xbf16>, vector<128x128xbf16>, vector<8x128xf32> -> vector<8x128xf32>
    %c0_15 = arith.constant 0 : index
    %c0_16 = arith.constant 0 : index
    %20 = vector.load %arg7[%c0_15, %c0_16] : memref<1x128xf32, #tpu.memory_space<vmem>>, vector<1x128xf32>
    %21 = vector.broadcast %20 : vector<1x128xf32> to vector<8x128xf32>
    %22 = arith.addf %19, %21 : vector<8x128xf32>
    %cst_17 = arith.constant dense<0xFF800000> : vector<8xf32>
    %23 = vector.multi_reduction <maximumf>, %22, %cst_17 [1] : vector<8x128xf32> to vector<8xf32>
    %24 = vector.shape_cast %23 : vector<8xf32> to vector<8x1xf32>
    %25 = vector.broadcast %24 : vector<8x1xf32> to vector<8x128xf32>
    %26 = arith.subf %22, %25 : vector<8x128xf32>
    %27 = math.exp %26 : vector<8x128xf32>
    %cst_18 = arith.constant dense<0.000000e+00> : vector<8xf32>
    %28 = vector.multi_reduction <add>, %27, %cst_18 [1] : vector<8x128xf32> to vector<8xf32>
    %29 = vector.shape_cast %28 : vector<8xf32> to vector<8x1xf32>
    %30 = vector.broadcast %29 : vector<8x1xf32> to vector<8x128xf32>
    %31 = arith.divf %27, %30 : vector<8x128xf32>
    %c0_19 = arith.constant 0 : index
    %c0_20 = arith.constant 0 : index
    %32 = vector.load %arg8[%c0_19, %c0_20] : memref<8x128xf32, #tpu.memory_space<vmem>>, vector<8x128xf32>
    tpu.vector_store %arg8[%c0_19, %c0_20], %31 {strides = array<i32>} : memref<8x128xf32, #tpu.memory_space<vmem>>, vector<8x128xf32>,
    return
  }
  func.func @transform_0(%arg0: i32) -> (i32, i32) {
    %c0_i32 = arith.constant 0 : i32
    %c0_i32_0 = arith.constant 0 : i32
    return %arg0, %c0_i32 : i32, i32
  }
  func.func @transform_1(%arg0: i32) -> (i32, i32) {
    %c0_i32 = arith.constant 0 : i32
    %c0_i32_0 = arith.constant 0 : i32
    %c0_i32_1 = arith.constant 0 : i32
    return %c0_i32, %c0_i32_0 : i32, i32
  }
  func.func @transform_2(%arg0: i32) -> (i32, i32) {
    %c0_i32 = arith.constant 0 : i32
    %c0_i32_0 = arith.constant 0 : i32
    %c0_i32_1 = arith.constant 0 : i32
    return %c0_i32, %c0_i32_0 : i32, i32
  }
  func.func @transform_3(%arg0: i32) -> (i32, i32) {
    %c0_i32 = arith.constant 0 : i32
    %c0_i32_0 = arith.constant 0 : i32
    %c0_i32_1 = arith.constant 0 : i32
    return %c0_i32, %c0_i32_0 : i32, i32
  }
  func.func @transform_4(%arg0: i32) -> (i32, i32) {
    %c0_i32 = arith.constant 0 : i32
    %c0_i32_0 = arith.constant 0 : i32
    %c0_i32_1 = arith.constant 0 : i32
    return %c0_i32, %c0_i32_0 : i32, i32
  }
  func.func @transform_5(%arg0: i32) -> (i32, i32) {
    %c0_i32 = arith.constant 0 : i32
    %c0_i32_0 = arith.constant 0 : i32
    %c0_i32_1 = arith.constant 0 : i32
    return %c0_i32, %c0_i32_0 : i32, i32
  }
  func.func @transform_6(%arg0: i32) -> (i32, i32) {
    %c0_i32 = arith.constant 0 : i32
    %c0_i32_0 = arith.constant 0 : i32
    %c0_i32_1 = arith.constant 0 : i32
    return %c0_i32, %c0_i32_0 : i32, i32
  }
  func.func @transform_7(%arg0: i32) -> (i32, i32) {
    %c0_i32 = arith.constant 0 : i32
    %c0_i32_0 = arith.constant 0 : i32
    return %arg0, %c0_i32 : i32, i32
  }
}

</mosaic_0001>

<bundles_post_ra>
// kernel: tpu_custom_call.1
= control target key start
LH: loop header
LB: loop body
LE: loop exit
PB: predicated region body
PF: predicated region fallthrough
CT: control target
= control target key end

     0   :  { %12 = vsyncpa [#allocation3], 0  ;;  %s739_s0 = inlined_call_operand.hbm [shape: f32[8,32], index: 0, kind: input, shape index: {}]   ;;  %s740_s1 = inlined_call_operand.hbm [shape: bf16[32,128], index: 1, kind: input, shape index: {}]   ;;  %s741_s2 = inlined_call_operand.vmem [shape: f32[1,128], index: 2, kind: input, shape index: {}]   ;;  %s742_s3 = inlined_call_operand.hbm [shape: bf16[128,128], index: 3, kind: input, shape index: {}]   ;;  %s743_s4 = inlined_call_operand.vmem [shape: f32[1,128], index: 4, kind: input, shape index: {}]   ;;  %s744_s5 = inlined_call_operand.hbm [shape: bf16[128,128], index: 5, kind: input, shape index: {}]   ;;  %s745_s6 = inlined_call_operand.vmem [shape: f32[1,128], index: 6, kind: input, shape index: {}]   ;;  %s746_s7 = inlined_call_operand.hbm [shape: f32[8,128], index: 7, kind: output, shape index: {}]  }
   0x1   :  { %13 = vsyncpa [#allocation6], 0 }
   0x2   :  { %14 = vsyncpa [#allocation9], 0 }
   0x3   :  { %15 = vsyncpa [#allocation4], 0  ;;  %s633_s24 = smov [#allocation5]  }
   0x4   :  { %s31_s25 = sshll.u32 %s633_s24, 4  ;;  %s32_s25 = int_to_ptr.vmem [resolvable:$true] %s31_s25 }
   0x5   :  { %s533_s26 = scalar_lea.vmem %s32_s25, 256  ;;  %p538_p1 = scmp.lt.s32.totalorder %s32_s25, %s32_s25 }
   0x6   :  { %p534_p0 = scmp.ne.s32.totalorder %s32_s25, %s533_s26  ;;  %p539_p2 = scmp.lt.s32.totalorder %s533_s26, %s533_s26 }
   0x8   :  { %p540_p3 = por %p539_p2, %p538_p1 }
   0xa   :  { %p541_p4 = pnand %p540_p3, %p534_p0 }
   0xc   :  { %544 = shalt.err (!%p541_p4)
}
   0xd   :  { %s634_s27 = smov 64   ;;  %s635_s28 = smov 4  }
   0xe   :  { %37 = dma.hbm_to_vmem [thread:$0]  %s740_s1, 256, %s32_s25, [#allocation6], %s634_s27, %s634_s27, %s635_s28  }
   0xf   :  { %s636_s8 = smov [#allocation2]   ;;  %s637_s10 = smov [#allocation7]  }
  0x10   :  { %s22_s9 = sshll.u32 %s636_s8, 4  ;;  %s45_s11 = sshll.u32 %s637_s10, 4  ;;  %s23_s9 = int_to_ptr.vmem [resolvable:$true] %s22_s9  ;;  %s46_s11 = int_to_ptr.vmem [resolvable:$true] %s45_s11 }
  0x11   :  { %s553_s12 = scalar_lea.vmem %s23_s9, 128  ;;  %p558_p6 = scmp.lt.s32.totalorder %s23_s9, %s23_s9 }
  0x12   :  { %p554_p5 = scmp.ne.s32.totalorder %s23_s9, %s553_s12  ;;  %p559_p7 = scmp.lt.s32.totalorder %s553_s12, %s553_s12 }
  0x14   :  { %p560_p8 = por %p559_p7, %p558_p6 }
  0x16   :  { %p561_p9 = pnand %p560_p8, %p554_p5 }
  0x18   :  { %564 = shalt.err (!%p561_p9)
}
  0x19   :  { %25 = dma.hbm_to_vmem [thread:$0]  %s739_s0, 128, %s23_s9, [#allocation3]  }
  0x1a   :  { %s573_s15 = scalar_lea.vmem %s46_s11, 1024  ;;  %p578_p11 = scmp.lt.s32.totalorder %s46_s11, %s46_s11 }
  0x1b   :  { %p574_p10 = scmp.ne.s32.totalorder %s46_s11, %s573_s15  ;;  %p579_p12 = scmp.lt.s32.totalorder %s573_s15, %s573_s15 }
  0x1d   :  { %p580_p13 = por %p579_p12, %p578_p11 }
  0x1f   :  { %p581_p0 = pnand %p580_p13, %p574_p10 }
  0x21   :  { %584 = shalt.err (!%p581_p0)
}
  0x22   :  { %51 = dma.hbm_to_vmem [thread:$0]  %s742_s3, 1024, %s46_s11, [#allocation6], %s634_s27, %s634_s27, %s635_s28  }
  0x23   :  { %s638_s17 = smov [#allocation8]  }
  0x24   :  { %s59_s18 = sshll.u32 %s638_s17, 4  ;;  %s60_s18 = int_to_ptr.vmem [resolvable:$true] %s59_s18 }
  0x25   :  { %s593_s19 = scalar_lea.vmem %s60_s18, 1024  ;;  %p598_p2 = scmp.lt.s32.totalorder %s60_s18, %s60_s18 }
  0x26   :  { %p594_p1 = scmp.ne.s32.totalorder %s60_s18, %s593_s19  ;;  %p599_p3 = scmp.lt.s32.totalorder %s593_s19, %s593_s19 }
  0x28   :  { %p600_p4 = por %p599_p3, %p598_p2 }
  0x2a   :  { %p601_p5 = pnand %p600_p4, %p594_p1 }
  0x2c   :  { %604 = shalt.err (!%p601_p5)
}
  0x2d   :  { %65 = dma.hbm_to_vmem [thread:$0]  %s744_s5, 1024, %s60_s18, [#allocation9], %s634_s27, %s634_s27, %s635_s28  }
  0x2e   :  { %625 = dma.done.wait [#allocation3], 128  }
  0x2f   :  { %626 = vsyncadd [#allocation3], 4294967168 }
  0x30   :  { %627 = dma.done.wait [#allocation6], 1280  }
  0x31   :  { %628 = vsyncadd [#allocation6], 4294966016 }
  0x32   :  { %629 = dma.done.wait [#allocation9], 1024  }
  0x33   :  { %630 = vsyncadd [#allocation9], 4294966272  ;;  %v639_v0 = vmov 0.0   ;;  %vm640_vm0 = vmmov 0   ;;  %v503_v1 = vld [vmem:[#allocation5 + $0x8] sm:$0xff]   ;;  %v504_v2 = vld [vmem:[#allocation5] sm:$0xff]  }
  0x34   :  { %446 = vmatprep.subr.bf16.mxu0 %v639_v0  ;;  %450 = vmatprep.mubr.msk.bf16.mxu0 %vm640_vm0, %v639_v0  ;;  %v81_v3 = vld [vmem:[#allocation2] sm:$0xff]  ;;  %v505_v4 = vld [vmem:[#allocation7 + $0x38] sm:$0xff]   ;;  %v506_v6 = vld [vmem:[#allocation7 + $0x30] sm:$0xff]   ;;  %vm106_vm1 = vcmask 261120  }
  0x35   :  { %454 = vmatprep.subr.bf16.mxu1 %v639_v0  ;;  %470 = vmatprep.mubr.msk.bf16.mxu1 %vm640_vm0, %v639_v0  ;;  %v82_v5 = vpack.c.bf16 %v81_v3, %v81_v3  ;;  %v507_v7 = vld [vmem:[#allocation7 + $0x28] sm:$0xff]   ;;  %v508_v8 = vld [vmem:[#allocation7 + $0x20] sm:$0xff]   ;;  %v509_v9 = vld [vmem:[#allocation7 + $0x18] sm:$0xff]  }
  0x36   :  { %447 = vmatpush3.bf16.msra.mxu0 %v503_v1  ;;  %455 = vmatpush3.bf16.msra.mxu1 %v505_v4  ;;  %v510_v10 = vld [vmem:[#allocation7 + $0x10] sm:$0xff]   ;;  %v511_v11 = vld [vmem:[#allocation7 + $0x8] sm:$0xff]   ;;  %v512_v12 = vld [vmem:[#allocation7] sm:$0xff]  }
  0x37   :  { %448 = vmatprep.subr.bf16.mxu0 %v639_v0  ;;  %456 = vmatprep.subr.bf16.mxu1 %v639_v0  ;;  %v513_v13 = vld [vmem:[#allocation8 + $0x38] sm:$0xff]   ;;  %v514_v14 = vld [vmem:[#allocation8 + $0x30] sm:$0xff]   ;;  %v515_v15 = vld [vmem:[#allocation8 + $0x28] sm:$0xff]  }
  0x38   :  { %v516_v16 = vld [vmem:[#allocation8 + $0x20] sm:$0xff]   ;;  %v517_v17 = vld [vmem:[#allocation8 + $0x18] sm:$0xff]   ;;  %v518_v18 = vld [vmem:[#allocation8 + $0x10] sm:$0xff]  }
  0x39   :  { %v403_v19 = vld [vmem:[%s741_s2] ss:$0 sm:$0xff]  ;;  %v520_v28 = vld [vmem:[#allocation8] sm:$0xff]  }
  0x3a   :  { %449 = vmatpush3.bf16.msra.mxu0 %v504_v2  ;;  %457 = vmatpush3.bf16.msra.mxu1 %v506_v6  ;;  %v519_v27 = vld [vmem:[#allocation8 + $0x8] sm:$0xff]  }
  0x3b   :  { %474 = vmatprep.subr.bf16.mxu0 %v639_v0  ;;  %458 = vmatprep.subr.bf16.mxu1 %v639_v0  ;;  %v407_v29 = vld [vmem:[%s743_s4] ss:$0 sm:$0xff]  ;;  %s641_s4 = smov [#allocation10]  }
  0x3c   :  { %v416_v37 = vld [vmem:[%s745_s6] ss:$0 sm:$0xff]  ;;  %s392_s24 = sshll.u32 %s641_s4, 4  ;;  %s393_s24 = int_to_ptr.vmem [resolvable:$true] %s392_s24 }
  0x3d   :  { %451 = vmatmul.mubr.msk.bf16.vlgmr.msra.gmra.mxu0 %vm106_vm1, %v82_v5  ;;  %s605_s6 = scalar_lea.vmem %s393_s24, 128  ;;  %p610_p7 = scmp.lt.s32.totalorder %s393_s24, %s393_s24 }
  0x3e   :  { %490 = vmatprep.mubr.msk.bf16.mxu0 %vm640_vm0, %v639_v0  ;;  %459 = vmatpush3.bf16.msra.mxu1 %v507_v7  ;;  %p606_p6 = scmp.ne.s32.totalorder %s393_s24, %s605_s6  ;;  %p611_p8 = scmp.lt.s32.totalorder %s605_s6, %s605_s6 }
  0x3f   :  { %460 = vmatprep.subr.bf16.mxu1 %v639_v0  ;;  %475 = vmatpush3.bf16.msra.mxu0 %v513_v13 }
  0x40   :  { %476 = vmatprep.subr.bf16.mxu0 %v639_v0  ;;  %p612_p9 = por %p611_p8, %p610_p7 }
  0x42   :  { %461 = vmatpush3.bf16.msra.mxu1 %v508_v8  ;;  %p613_p10 = pnand %p612_p9, %p606_p6 }
  0x43   :  { %462 = vmatprep.subr.bf16.mxu1 %v639_v0  ;;  %477 = vmatpush3.bf16.msra.mxu0 %v514_v14 }
  0x44   :  { %478 = vmatprep.subr.bf16.mxu0 %v639_v0 }
  0x46   :  { %463 = vmatpush3.bf16.msra.mxu1 %v509_v9 }
  0x47   :  { %464 = vmatprep.subr.bf16.mxu1 %v639_v0  ;;  %479 = vmatpush3.bf16.msra.mxu0 %v515_v15 }
  0x48   :  { %480 = vmatprep.subr.bf16.mxu0 %v639_v0 }
  0x4a   :  { %465 = vmatpush3.bf16.msra.mxu1 %v510_v10 }
  0x4b   :  { %466 = vmatprep.subr.bf16.mxu1 %v639_v0  ;;  %481 = vmatpush3.bf16.msra.mxu0 %v516_v16 }
  0x4c   :  { %482 = vmatprep.subr.bf16.mxu0 %v639_v0 }
  0x4e   :  { %467 = vmatpush3.bf16.msra.mxu1 %v511_v11 }
  0x4f   :  { %468 = vmatprep.subr.bf16.mxu1 %v639_v0  ;;  %483 = vmatpush3.bf16.msra.mxu0 %v517_v17 }
  0x50   :  { %484 = vmatprep.subr.bf16.mxu0 %v639_v0 }
  0x52   :  { %469 = vmatpush3.bf16.msra.mxu1 %v512_v12 }
  0x53   :  { %485 = vmatpush3.bf16.msra.mxu0 %v518_v18 }
  0x54   :  { %486 = vmatprep.subr.bf16.mxu0 %v639_v0 }
  0x57   :  { %487 = vmatpush3.bf16.msra.mxu0 %v519_v27 }
  0x58   :  { %488 = vmatprep.subr.bf16.mxu0 %v639_v0 }
  0x5b   :  { %489 = vmatpush3.bf16.msra.mxu0 %v520_v28 }
  0xfd   :  { %v144_v20 = vpop.f32.mrf.mxu0 }
  0xfe   :  { %v145_v21 = vadd.f32 %v403_v19, %v144_v20 }
  0xff   :  { %v452_v22 = vpop.f32.mrf.mxu0 }
 0x100   :  { %v150_v23 = vmax.f32 %v145_v21, 0.0 }
 0x101   :  { %v147_v24 = vpop.f32.mrf.mxu0 }
 0x102   :  { %v151_v25 = vpack.c.bf16 %v150_v23, %v150_v23 }
 0x103   :  { %v453_v26 = vpop.f32.mrf.mxu0 }
 0x104   :  { %471 = vmatmul.mubr.bf16.vlgmr.msra.gmra.mxu1 %v151_v25 }
 0x1c4   :  { %v257_v30 = vpop.f32.mrf.mxu1 }
 0x1c5   :  { %v258_v31 = vadd.f32 %v407_v29, %v257_v30 }
 0x1c6   :  { %v472_v32 = vpop.f32.mrf.mxu1 }
 0x1c7   :  { %v263_v33 = vmax.f32 %v258_v31, 0.0 }
 0x1c8   :  { %v260_v34 = vpop.f32.mrf.mxu1 }
 0x1c9   :  { %v264_v35 = vpack.c.bf16 %v263_v33, %v263_v33 }
 0x1ca   :  { %v473_v36 = vpop.f32.mrf.mxu1 }
 0x1cb   :  { %491 = vmatmul.mubr.bf16.vlgmr.msra.gmra.mxu0 %v264_v35 }
 0x28b   :  { %v370_v38 = vpop.f32.mrf.mxu0 }
 0x28c   :  { %v371_v39 = vadd.f32 %v416_v37, %v370_v38 }
 0x28d   :  { %v492_v40 = vpop.f32.mrf.mxu0 }
 0x28e   :  { %376 = vmax.xlane.f32.xlu0 %v371_v39 }
 0x28f   :  { %v373_v41 = vpop.f32.mrf.mxu0 }
 0x291   :  { %v493_v42 = vpop.f32.mrf.mxu0 }
 0x317   :  { %v377_v43 = vpop.xlane.xlu0 %376 }
 0x318   :  { %v378_v44 = vsub.f32 %v371_v39, %v377_v43 }
 0x31a   :  { %v379_v45 = vmul.f32 1.442695, %v378_v44 }
 0x31c   :  { %521 = vpow2.f32 %v379_v45 }
 0x329   :  { %v522_v46 = vpop.eup %521 }
 0x32a   :  { %381 = vadd.xlane.f32.xlu0 %v522_v46 }
 0x3b3   :  { %v382_v47 = vpop.xlane.xlu0 %381 }
 0x3b4   :  { %523 = vrcp.f32 %v382_v47 }
 0x3c1   :  { %v524_v48 = vpop.eup %523 }
 0x3c2   :  { %v384_v49 = vmul.f32 %v524_v48, %v522_v46 }
 0x3c4   :  { %385 = vst [vmem:[#allocation10] sm:$0xff] %v384_v49 }
 0x3c5   :  { %616 = shalt.err (!%p613_p10)
}
 0x3c6   :  { %395 = dma.vmem_to_hbm [thread:$0]  %s393_s24, 128, %s746_s7, [#allocation4]  }
 0x3c7   :  { %631 = dma.done.wait [#allocation4], 128  }
 0x3c8   :  { %632 = vsyncadd [#allocation4], 4294967168 }
 0x3c9   :  { %399 = vsyncpa [#allocation3], 1 }
 0x3ca   :  { %400 = vsyncpa [#allocation6], 1 }
 0x3cb   :  { %401 = vsyncpa [#allocation9], 1 }
 0x3cc   :  { %402 = vsyncpa [#allocation4], 1 }

// kernel: tpu_custom_call.1
= control target key start
LH: loop header
LB: loop body
LE: loop exit
PB: predicated region body
PF: predicated region fallthrough
CT: control target
= control target key end

     0   :  { %12 = vsyncpa [#allocation3], 0  ;;  %s739_s0 = inlined_call_operand.hbm [shape: f32[8,32], index: 0, kind: input, shape index: {}]   ;;  %s740_s1 = inlined_call_operand.hbm [shape: bf16[32,128], index: 1, kind: input, shape index: {}]   ;;  %s741_s2 = inlined_call_operand.vmem [shape: f32[1,128], index: 2, kind: input, shape index: {}]   ;;  %s742_s3 = inlined_call_operand.hbm [shape: bf16[128,128], index: 3, kind: input, shape index: {}]   ;;  %s743_s4 = inlined_call_operand.vmem [shape: f32[1,128], index: 4, kind: input, shape index: {}]   ;;  %s744_s5 = inlined_call_operand.hbm [shape: bf16[128,128], index: 5, kind: input, shape index: {}]   ;;  %s745_s6 = inlined_call_operand.vmem [shape: f32[1,128], index: 6, kind: input, shape index: {}]   ;;  %s746_s7 = inlined_call_operand.hbm [shape: f32[8,128], index: 7, kind: output, shape index: {}]  }
   0x1   :  { %13 = vsyncpa [#allocation6], 0 }
   0x2   :  { %14 = vsyncpa [#allocation9], 0 }
   0x3   :  { %15 = vsyncpa [#allocation4], 0  ;;  %s633_s24 = smov [#allocation5]  }
   0x4   :  { %s31_s25 = sshll.u32 %s633_s24, 4  ;;  %s32_s25 = int_to_ptr.vmem [resolvable:$true] %s31_s25 }
   0x5   :  { %s533_s26 = scalar_lea.vmem %s32_s25, 256  ;;  %p538_p1 = scmp.lt.s32.totalorder %s32_s25, %s32_s25 }
   0x6   :  { %p534_p0 = scmp.ne.s32.totalorder %s32_s25, %s533_s26  ;;  %p539_p2 = scmp.lt.s32.totalorder %s533_s26, %s533_s26 }
   0x8   :  { %p540_p3 = por %p539_p2, %p538_p1 }
   0xa   :  { %p541_p4 = pnand %p540_p3, %p534_p0 }
   0xc   :  { %544 = shalt.err (!%p541_p4)
}
   0xd   :  { %s634_s27 = smov 64   ;;  %s635_s28 = smov 4  }
   0xe   :  { %37 = dma.hbm_to_vmem [thread:$0]  %s740_s1, 256, %s32_s25, [#allocation6], %s634_s27, %s634_s27, %s635_s28  }
   0xf   :  { %s636_s8 = smov [#allocation2]   ;;  %s637_s10 = smov [#allocation7]  }
  0x10   :  { %s22_s9 = sshll.u32 %s636_s8, 4  ;;  %s45_s11 = sshll.u32 %s637_s10, 4  ;;  %s23_s9 = int_to_ptr.vmem [resolvable:$true] %s22_s9  ;;  %s46_s11 = int_to_ptr.vmem [resolvable:$true] %s45_s11 }
  0x11   :  { %s553_s12 = scalar_lea.vmem %s23_s9, 128  ;;  %p558_p6 = scmp.lt.s32.totalorder %s23_s9, %s23_s9 }
  0x12   :  { %p554_p5 = scmp.ne.s32.totalorder %s23_s9, %s553_s12  ;;  %p559_p7 = scmp.lt.s32.totalorder %s553_s12, %s553_s12 }
  0x14   :  { %p560_p8 = por %p559_p7, %p558_p6 }
  0x16   :  { %p561_p9 = pnand %p560_p8, %p554_p5 }
  0x18   :  { %564 = shalt.err (!%p561_p9)
}
  0x19   :  { %25 = dma.hbm_to_vmem [thread:$0]  %s739_s0, 128, %s23_s9, [#allocation3]  }
  0x1a   :  { %s573_s15 = scalar_lea.vmem %s46_s11, 1024  ;;  %p578_p11 = scmp.lt.s32.totalorder %s46_s11, %s46_s11 }
  0x1b   :  { %p574_p10 = scmp.ne.s32.totalorder %s46_s11, %s573_s15  ;;  %p579_p12 = scmp.lt.s32.totalorder %s573_s15, %s573_s15 }
  0x1d   :  { %p580_p13 = por %p579_p12, %p578_p11 }
  0x1f   :  { %p581_p0 = pnand %p580_p13, %p574_p10 }
  0x21   :  { %584 = shalt.err (!%p581_p0)
}
  0x22   :  { %51 = dma.hbm_to_vmem [thread:$0]  %s742_s3, 1024, %s46_s11, [#allocation6], %s634_s27, %s634_s27, %s635_s28  }
  0x23   :  { %s638_s17 = smov [#allocation8]  }
  0x24   :  { %s59_s18 = sshll.u32 %s638_s17, 4  ;;  %s60_s18 = int_to_ptr.vmem [resolvable:$true] %s59_s18 }
  0x25   :  { %s593_s19 = scalar_lea.vmem %s60_s18, 1024  ;;  %p598_p2 = scmp.lt.s32.totalorder %s60_s18, %s60_s18 }
  0x26   :  { %p594_p1 = scmp.ne.s32.totalorder %s60_s18, %s593_s19  ;;  %p599_p3 = scmp.lt.s32.totalorder %s593_s19, %s593_s19 }
  0x28   :  { %p600_p4 = por %p599_p3, %p598_p2 }
  0x2a   :  { %p601_p5 = pnand %p600_p4, %p594_p1 }
  0x2c   :  { %604 = shalt.err (!%p601_p5)
}
  0x2d   :  { %65 = dma.hbm_to_vmem [thread:$0]  %s744_s5, 1024, %s60_s18, [#allocation9], %s634_s27, %s634_s27, %s635_s28  }
  0x2e   :  { %625 = dma.done.wait [#allocation3], 128  }
  0x2f   :  { %626 = vsyncadd [#allocation3], 4294967168 }
  0x30   :  { %627 = dma.done.wait [#allocation6], 1280  }
  0x31   :  { %628 = vsyncadd [#allocation6], 4294966016 }
  0x32   :  { %629 = dma.done.wait [#allocation9], 1024  }
  0x33   :  { %630 = vsyncadd [#allocation9], 4294966272  ;;  %v639_v0 = vmov 0.0   ;;  %vm640_vm0 = vmmov 0   ;;  %v503_v1 = vld [vmem:[#allocation5 + $0x8] sm:$0xff]   ;;  %v504_v2 = vld [vmem:[#allocation5] sm:$0xff]  }
  0x34   :  { %446 = vmatprep.subr.bf16.mxu0 %v639_v0  ;;  %450 = vmatprep.mubr.msk.bf16.mxu0 %vm640_vm0, %v639_v0  ;;  %v81_v3 = vld [vmem:[#allocation2] sm:$0xff]  ;;  %v505_v4 = vld [vmem:[#allocation7 + $0x38] sm:$0xff]   ;;  %v506_v6 = vld [vmem:[#allocation7 + $0x30] sm:$0xff]   ;;  %vm106_vm1 = vcmask 261120  }
  0x35   :  { %454 = vmatprep.subr.bf16.mxu1 %v639_v0  ;;  %470 = vmatprep.mubr.msk.bf16.mxu1 %vm640_vm0, %v639_v0  ;;  %v82_v5 = vpack.c.bf16 %v81_v3, %v81_v3  ;;  %v507_v7 = vld [vmem:[#allocation7 + $0x28] sm:$0xff]   ;;  %v508_v8 = vld [vmem:[#allocation7 + $0x20] sm:$0xff]   ;;  %v509_v9 = vld [vmem:[#allocation7 + $0x18] sm:$0xff]  }
  0x36   :  { %447 = vmatpush3.bf16.msra.mxu0 %v503_v1  ;;  %455 = vmatpush3.bf16.msra.mxu1 %v505_v4  ;;  %v510_v10 = vld [vmem:[#allocation7 + $0x10] sm:$0xff]   ;;  %v511_v11 = vld [vmem:[#allocation7 + $0x8] sm:$0xff]   ;;  %v512_v12 = vld [vmem:[#allocation7] sm:$0xff]  }
  0x37   :  { %448 = vmatprep.subr.bf16.mxu0 %v639_v0  ;;  %456 = vmatprep.subr.bf16.mxu1 %v639_v0  ;;  %v513_v13 = vld [vmem:[#allocation8 + $0x38] sm:$0xff]   ;;  %v514_v14 = vld [vmem:[#allocation8 + $0x30] sm:$0xff]   ;;  %v515_v15 = vld [vmem:[#allocation8 + $0x28] sm:$0xff]  }
  0x38   :  { %v516_v16 = vld [vmem:[#allocation8 + $0x20] sm:$0xff]   ;;  %v517_v17 = vld [vmem:[#allocation8 + $0x18] sm:$0xff]   ;;  %v518_v18 = vld [vmem:[#allocation8 + $0x10] sm:$0xff]  }
  0x39   :  { %v403_v19 = vld [vmem:[%s741_s2] ss:$0 sm:$0xff]  ;;  %v520_v28 = vld [vmem:[#allocation8] sm:$0xff]  }
  0x3a   :  { %449 = vmatpush3.bf16.msra.mxu0 %v504_v2  ;;  %457 = vmatpush3.bf16.msra.mxu1 %v506_v6  ;;  %v519_v27 = vld [vmem:[#allocation8 + $0x8] sm:$0xff]  }
  0x3b   :  { %474 = vmatprep.subr.bf16.mxu0 %v639_v0  ;;  %458 = vmatprep.subr.bf16.mxu1 %v639_v0  ;;  %v407_v29 = vld [vmem:[%s743_s4] ss:$0 sm:$0xff]  ;;  %s641_s4 = smov [#allocation10]  }
  0x3c   :  { %v416_v37 = vld [vmem:[%s745_s6] ss:$0 sm:$0xff]  ;;  %s392_s24 = sshll.u32 %s641_s4, 4  ;;  %s393_s24 = int_to_ptr.vmem [resolvable:$true] %s392_s24 }
  0x3d   :  { %451 = vmatmul.mubr.msk.bf16.vlgmr.msra.gmra.mxu0 %vm106_vm1, %v82_v5  ;;  %s605_s6 = scalar_lea.vmem %s393_s24, 128  ;;  %p610_p7 = scmp.lt.s32.totalorder %s393_s24, %s393_s24 }
  0x3e   :  { %490 = vmatprep.mubr.msk.bf16.mxu0 %vm640_vm0, %v639_v0  ;;  %459 = vmatpush3.bf16.msra.mxu1 %v507_v7  ;;  %p606_p6 = scmp.ne.s32.totalorder %s393_s24, %s605_s6  ;;  %p611_p8 = scmp.lt.s32.totalorder %s605_s6, %s605_s6 }
  0x3f   :  { %460 = vmatprep.subr.bf16.mxu1 %v639_v0  ;;  %475 = vmatpush3.bf16.msra.mxu0 %v513_v13 }
  0x40   :  { %476 = vmatprep.subr.bf16.mxu0 %v639_v0  ;;  %p612_p9 = por %p611_p8, %p610_p7 }
  0x42   :  { %461 = vmatpush3.bf16.msra.mxu1 %v508_v8  ;;  %p613_p10 = pnand %p612_p9, %p606_p6 }
  0x43   :  { %462 = vmatprep.subr.bf16.mxu1 %v639_v0  ;;  %477 = vmatpush3.bf16.msra.mxu0 %v514_v14 }
  0x44   :  { %478 = vmatprep.subr.bf16.mxu0 %v639_v0 }
  0x46   :  { %463 = vmatpush3.bf16.msra.mxu1 %v509_v9 }
  0x47   :  { %464 = vmatprep.subr.bf16.mxu1 %v639_v0  ;;  %479 = vmatpush3.bf16.msra.mxu0 %v515_v15 }
  0x48   :  { %480 = vmatprep.subr.bf16.mxu0 %v639_v0 }
  0x4a   :  { %465 = vmatpush3.bf16.msra.mxu1 %v510_v10 }
  0x4b   :  { %466 = vmatprep.subr.bf16.mxu1 %v639_v0  ;;  %481 = vmatpush3.bf16.msra.mxu0 %v516_v16 }
  0x4c   :  { %482 = vmatprep.subr.bf16.mxu0 %v639_v0 }
  0x4e   :  { %467 = vmatpush3.bf16.msra.mxu1 %v511_v11 }
  0x4f   :  { %468 = vmatprep.subr.bf16.mxu1 %v639_v0  ;;  %483 = vmatpush3.bf16.msra.mxu0 %v517_v17 }
  0x50   :  { %484 = vmatprep.subr.bf16.mxu0 %v639_v0 }
  0x52   :  { %469 = vmatpush3.bf16.msra.mxu1 %v512_v12 }
  0x53   :  { %485 = vmatpush3.bf16.msra.mxu0 %v518_v18 }
  0x54   :  { %486 = vmatprep.subr.bf16.mxu0 %v639_v0 }
  0x57   :  { %487 = vmatpush3.bf16.msra.mxu0 %v519_v27 }
  0x58   :  { %488 = vmatprep.subr.bf16.mxu0 %v639_v0 }
  0x5b   :  { %489 = vmatpush3.bf16.msra.mxu0 %v520_v28 }
  0xfd   :  { %v144_v20 = vpop.f32.mrf.mxu0 }
  0xfe   :  { %v145_v21 = vadd.f32 %v403_v19, %v144_v20 }
  0xff   :  { %v452_v22 = vpop.f32.mrf.mxu0 }
 0x100   :  { %v150_v23 = vmax.f32 %v145_v21, 0.0 }
 0x101   :  { %v147_v24 = vpop.f32.mrf.mxu0 }
 0x102   :  { %v151_v25 = vpack.c.bf16 %v150_v23, %v150_v23 }
 0x103   :  { %v453_v26 = vpop.f32.mrf.mxu0 }
 0x104   :  { %471 = vmatmul.mubr.bf16.vlgmr.msra.gmra.mxu1 %v151_v25 }
 0x1c4   :  { %v257_v30 = vpop.f32.mrf.mxu1 }
 0x1c5   :  { %v258_v31 = vadd.f32 %v407_v29, %v257_v30 }
 0x1c6   :  { %v472_v32 = vpop.f32.mrf.mxu1 }
 0x1c7   :  { %v263_v33 = vmax.f32 %v258_v31, 0.0 }
 0x1c8   :  { %v260_v34 = vpop.f32.mrf.mxu1 }
 0x1c9   :  { %v264_v35 = vpack.c.bf16 %v263_v33, %v263_v33 }
 0x1ca   :  { %v473_v36 = vpop.f32.mrf.mxu1 }
 0x1cb   :  { %491 = vmatmul.mubr.bf16.vlgmr.msra.gmra.mxu0 %v264_v35 }
 0x28b   :  { %v370_v38 = vpop.f32.mrf.mxu0 }
 0x28c   :  { %v371_v39 = vadd.f32 %v416_v37, %v370_v38 }
 0x28d   :  { %v492_v40 = vpop.f32.mrf.mxu0 }
 0x28e   :  { %376 = vmax.xlane.f32.xlu0 %v371_v39 }
 0x28f   :  { %v373_v41 = vpop.f32.mrf.mxu0 }
 0x291   :  { %v493_v42 = vpop.f32.mrf.mxu0 }
 0x317   :  { %v377_v43 = vpop.xlane.xlu0 %376 }
 0x318   :  { %v378_v44 = vsub.f32 %v371_v39, %v377_v43 }
 0x31a   :  { %v379_v45 = vmul.f32 1.442695, %v378_v44 }
 0x31c   :  { %521 = vpow2.f32 %v379_v45 }
 0x329   :  { %v522_v46 = vpop.eup %521 }
 0x32a   :  { %381 = vadd.xlane.f32.xlu0 %v522_v46 }
 0x3b3   :  { %v382_v47 = vpop.xlane.xlu0 %381 }
 0x3b4   :  { %523 = vrcp.f32 %v382_v47 }
 0x3c1   :  { %v524_v48 = vpop.eup %523 }
 0x3c2   :  { %v384_v49 = vmul.f32 %v524_v48, %v522_v46 }
 0x3c4   :  { %385 = vst [vmem:[#allocation10] sm:$0xff] %v384_v49 }
 0x3c5   :  { %616 = shalt.err (!%p613_p10)
}
 0x3c6   :  { %395 = dma.vmem_to_hbm [thread:$0]  %s393_s24, 128, %s746_s7, [#allocation4]  }
 0x3c7   :  { %631 = dma.done.wait [#allocation4], 128  }
 0x3c8   :  { %632 = vsyncadd [#allocation4], 4294967168 }
 0x3c9   :  { %399 = vsyncpa [#allocation3], 1 }
 0x3ca   :  { %400 = vsyncpa [#allocation6], 1 }
 0x3cb   :  { %401 = vsyncpa [#allocation9], 1 }
 0x3cc   :  { %402 = vsyncpa [#allocation4], 1 }

</bundles_post_ra>
